<compile_context>
chip_gen: v7x
topology: tpu7x:2x2x1
jax: 0.10.0
libtpu: 0.0.40
codegen_flags: <defaults>
</compile_context>

<pallas_src>
import jax
import jax.numpy as jnp
from jax.experimental import pallas as pl
from jax.experimental.pallas import tpu as pltpu


def _round_up(x: int, m: int) -> int:
    return ((x + m - 1) // m) * m


# A (TM, 1) 32-bit array in VMEM is lane-padded to the native (8, 128) tiling,
# i.e. it costs 512 bytes per row regardless of the logical 4 bytes per row.
_LANE_PADDED_ROW_BYTES = 512


def _choose_tile_rows(n: int, c: int, itemsize: int) -> int:
    """Pick TM (multiple of 8) from a VMEM byte budget based on actual dtype."""
    per_row_logits = max(1, itemsize * c)
    # Double-buffered logits tile + double-buffered (lane-padded) int32 targets
    # tile + one (lane-padded) f32 accumulator scratch.
    per_row_vmem = 2 * per_row_logits + 3 * _LANE_PADDED_ROW_BYTES
    budget_rows = max(8, (28 * 1024 * 1024) // per_row_vmem)
    # Past ~8 MiB per logits buffer the ~0.35us/step overhead is already fully
    # amortized; bigger tiles only burn VMEM headroom (v7x has 64 MiB total).
    cap_rows = max(8, (8 * 1024 * 1024) // per_row_logits)
    tm = min(budget_rows, cap_rows, _round_up(n, 8))
    return max(8, (tm // 8) * 8)


def _make_focal_ce_kernel(n_true: int, tm: int, alpha: float, gamma: float,
                          need_mask: bool):
    alpha = float(alpha)
    gamma = float(gamma)

    def kernel(logits_ref, targets_ref, out_ref, acc_ref):
        step = pl.program_id(0)
        last = pl.num_programs(0) - 1

        # --- init vector accumulator on first grid step -------------------
        @pl.when(step == 0)
        def _():
            acc_ref[...] = jnp.zeros_like(acc_ref)

        logits = logits_ref[...].astype(jnp.float32)            # (TM, C)
        tgt = targets_ref[...]                                   # (TM, 1) int32
        rows, c = logits.shape

        # Numerically-stable shifted logits; reused for LSE and the gather
        # (lse - tgt_logit == lse_shifted - tgt_logit_shifted).
        row_max = jnp.max(logits, axis=-1, keepdims=True)        # (TM, 1)
        shifted = logits - row_max                                # (TM, C)
        lse_shifted = jnp.log(
            jnp.sum(jnp.exp(shifted), axis=-1, keepdims=True))    # (TM, 1)

        # Target-logit gather via select + row reduce (VPU/XLU; MXU unused).
        col = jax.lax.broadcasted_iota(jnp.int32, (rows, c), 1)
        tgt_shifted = jnp.sum(
            jnp.where(col == tgt, shifted, 0.0), axis=-1, keepdims=True)

        per_sample = lse_shifted - tgt_shifted                    # (TM, 1) CE

        if need_mask:
            # Mask only the (partial) last block; full tiles skip this work.
            @pl.when(step == last)
            def _():
                row = (jax.lax.broadcasted_iota(jnp.int32, (rows, 1), 0)
                       + step * tm)
                acc_ref[...] += jnp.where(row < n_true, per_sample, 0.0)

            @pl.when(step < last)
            def _():
                acc_ref[...] += per_sample
        else:
            acc_ref[...] += per_sample

        # --- finalize: mean + focal transform on last grid step -----------
        @pl.when(step == last)
        def _():
            total = jnp.sum(acc_ref[...], keepdims=True)          # (1, 1)
            bce = total / jnp.float32(n_true)
            pt = jnp.exp(-bce)
            omp = 1.0 - pt
            if gamma == 2.0:
                mod = omp * omp
            elif gamma == 1.0:
                mod = omp
            elif gamma == 0.0:
                mod = jnp.ones_like(omp)
            else:
                mod = omp ** jnp.float32(gamma)
            out_ref[...] = (jnp.float32(alpha) * mod * bce).astype(out_ref.dtype)

    return kernel


def focal_bce_loss(logits, targets, alpha: float = 1.0, gamma: float = 2.0,
                   tile_rows: int | None = None):
    """Pallas equivalent of FocalBCELoss.forward(logits, targets)."""
    n, c = logits.shape
    targets2d = targets.astype(jnp.int32).reshape(n, 1)

    itemsize = jnp.dtype(logits.dtype).itemsize
    if tile_rows is None:
        tm = _choose_tile_rows(n, c, itemsize)
    else:
        tm = max(8, (int(tile_rows) // 8) * 8)

    grid_rows = pl.cdiv(n, tm)
    need_mask = (n % tm) != 0   # partial last block (no wrapper-side padding)

    kernel = _make_focal_ce_kernel(n, tm, alpha, gamma, need_mask)

    out = pl.pallas_call(
        kernel,
        out_shape=jax.ShapeDtypeStruct((1, 1), jnp.float32),
        grid_spec=pltpu.PrefetchScalarGridSpec(
            num_scalar_prefetch=0,
            grid=(grid_rows,),
            in_specs=[
                pl.BlockSpec((tm, c), lambda i: (i, 0)),   # logits tile
                pl.BlockSpec((tm, 1), lambda i: (i, 0)),   # targets tile
            ],
            out_specs=pl.BlockSpec((1, 1), lambda i: (0, 0)),       # scalar
            scratch_shapes=[pltpu.VMEM((tm, 1), jnp.float32)],      # CE accum
        ),
        compiler_params=pltpu.CompilerParams(
            dimension_semantics=("arbitrary",),            # reduction axis
            vmem_limit_bytes=48 * 1024 * 1024,
        ),
    )(logits, targets2d)
    return out[0, 0]


def _reference(logits, targets, alpha=1.0, gamma=2.0):
    # Pure-JAX reference mirroring torch.nn.CrossEntropyLoss (mean) + focal.
    logits = logits.astype(jnp.float32)
    lse = jax.nn.logsumexp(logits, axis=-1)
    tgt_logit = jnp.take_along_axis(
        logits, targets[:, None].astype(jnp.int32), axis=-1)[:, 0]
    bce = jnp.mean(lse - tgt_logit)
    pt = jnp.exp(-bce)
    return alpha * (1.0 - pt) ** gamma * bce


if __name__ == "__main__":
    key = jax.random.PRNGKey(0)
    k1, k2, k3, k4, k5, k6 = jax.random.split(key, 6)

    # Check 1: small shape consistent with the module (batch=8, classes=32).
    N, C = 8, 32
    logits = jax.random.normal(k1, (N, C), dtype=jnp.float32)
    targets = jax.random.randint(k2, (N,), 0, C, dtype=jnp.int32)
    loss = jax.block_until_ready(focal_bce_loss(logits, targets, 1.0, 2.0))
    ref = _reference(logits, targets, 1.0, 2.0)
    assert jnp.allclose(loss, ref, rtol=1e-5, atol=1e-5), (loss, ref)

    # Check 2: multi-tile grid + partial (masked) last block, no wrapper pad.
    N2, C2 = 200, 128
    logits2 = jax.random.normal(k3, (N2, C2), dtype=jnp.float32)
    targets2 = jax.random.randint(k4, (N2,), 0, C2, dtype=jnp.int32)
    loss2 = jax.block_until_ready(
        focal_bce_loss(logits2, targets2, 1.0, 2.0, tile_rows=64))
    ref2 = _reference(logits2, targets2, 1.0, 2.0)
    assert jnp.allclose(loss2, ref2, rtol=1e-4, atol=1e-5), (loss2, ref2)

    # Check 3: bf16 logits taken as-is (no wrapper upcast; f32 math in-kernel).
    N3, C3 = 64, 128
    logits3 = jax.random.normal(k5, (N3, C3), dtype=jnp.bfloat16)
    targets3 = jax.random.randint(k6, (N3,), 0, C3, dtype=jnp.int32)
    loss3 = jax.block_until_ready(focal_bce_loss(logits3, targets3, 1.0, 2.0))
    ref3 = _reference(logits3, targets3, 1.0, 2.0)
    assert jnp.allclose(loss3, ref3, rtol=5e-3, atol=1e-3), (loss3, ref3)

    print("KERNEL_OK")
</pallas_src>

<mosaic_0001>
module attributes {stable_mosaic.version = 11 : i64} {
  func.func @kernel(%arg0: i32, %arg1: memref<8x32xf32, #tpu.memory_space<vmem>>, %arg2: memref<8x1xi32, #tpu.memory_space<vmem>>, %arg3: memref<1x1xf32, #tpu.memory_space<vmem>>, %arg4: memref<8x1xf32, #tpu.memory_space<vmem>>) attributes {dimension_semantics = [#tpu.dimension_semantics<arbitrary>], iteration_bounds = array<i64: 1>, scalar_prefetch = 0 : i64, scratch_operands = 1 : i64, tpu.core_type = #tpu.core_type<tc>, window_params = [{transform_indices = @transform_0, window_bounds = array<i64: 8, 32>}, {transform_indices = @transform_1, window_bounds = array<i64: 8, 1>}, {pipeline_mode = #tpu.pipeline_mode<synchronous>, transform_indices = @transform_2, window_bounds = array<i64: 1, 1>}]} {
    %c0_i32 = arith.constant 0 : i32
    %0 = arith.cmpi eq, %arg0, %c0_i32 : i32
    %1 = arith.extui %0 : i1 to i32
    %c0_i32_0 = arith.constant 0 : i32
    %2 = arith.cmpi ne, %1, %c0_i32_0 : i32
    scf.if %2 {
      %cst_13 = arith.constant 0.000000e+00 : f32
      %27 = vector.broadcast %cst_13 : f32 to vector<8x1xf32>
      %c0_14 = arith.constant 0 : index
      %c0_15 = arith.constant 0 : index
      %28 = vector.load %arg4[%c0_14, %c0_15] : memref<8x1xf32, #tpu.memory_space<vmem>>, vector<8x1xf32>
      tpu.vector_store %arg4[%c0_14, %c0_15], %27 {strides = array<i32>} : memref<8x1xf32, #tpu.memory_space<vmem>>, vector<8x1xf32>,
    } else {
    }
    %c0 = arith.constant 0 : index
    %c0_1 = arith.constant 0 : index
    %3 = vector.load %arg1[%c0, %c0_1] : memref<8x32xf32, #tpu.memory_space<vmem>>, vector<8x32xf32>
    %c0_2 = arith.constant 0 : index
    %c0_3 = arith.constant 0 : index
    %4 = vector.load %arg2[%c0_2, %c0_3] : memref<8x1xi32, #tpu.memory_space<vmem>>, vector<8x1xi32>
    %cst = arith.constant dense<0xFF800000> : vector<8xf32>
    %5 = vector.multi_reduction <maximumf>, %3, %cst [1] : vector<8x32xf32> to vector<8xf32>
    %6 = vector.shape_cast %5 : vector<8xf32> to vector<8x1xf32>
    %7 = vector.broadcast %6 : vector<8x1xf32> to vector<8x32xf32>
    %8 = arith.subf %3, %7 : vector<8x32xf32>
    %9 = math.exp %8 : vector<8x32xf32>
    %cst_4 = arith.constant dense<0.000000e+00> : vector<8xf32>
    %10 = vector.multi_reduction <add>, %9, %cst_4 [1] : vector<8x32xf32> to vector<8xf32>
    %11 = vector.shape_cast %10 : vector<8xf32> to vector<8x1xf32>
    %12 = math.log %11 : vector<8x1xf32>
    %13 = tpu.iota {dimensions = array<i32: 1>} : vector<8x32xi32>
    %14 = vector.broadcast %4 : vector<8x1xi32> to vector<8x32xi32>
    %15 = arith.cmpi eq, %13, %14 : vector<8x32xi32>
    %cst_5 = arith.constant 0.000000e+00 : f32
    %16 = vector.broadcast %cst_5 : f32 to vector<8x32xf32>
    %17 = arith.select %15, %8, %16 : vector<8x32xi1>, vector<8x32xf32>
    %cst_6 = arith.constant dense<0.000000e+00> : vector<8xf32>
    %18 = vector.multi_reduction <add>, %17, %cst_6 [1] : vector<8x32xf32> to vector<8xf32>
    %19 = vector.shape_cast %18 : vector<8xf32> to vector<8x1xf32>
    %20 = arith.subf %12, %19 : vector<8x1xf32>
    %c0_7 = arith.constant 0 : index
    %c0_8 = arith.constant 0 : index
    %21 = vector.load %arg4[%c0_7, %c0_8] : memref<8x1xf32, #tpu.memory_space<vmem>>, vector<8x1xf32>
    %22 = arith.addf %21, %20 : vector<8x1xf32>
    %c0_9 = arith.constant 0 : index
    %c0_10 = arith.constant 0 : index
    %23 = vector.load %arg4[%c0_9, %c0_10] : memref<8x1xf32, #tpu.memory_space<vmem>>, vector<8x1xf32>
    tpu.vector_store %arg4[%c0_9, %c0_10], %22 {strides = array<i32>} : memref<8x1xf32, #tpu.memory_space<vmem>>, vector<8x1xf32>,
    %c0_i32_11 = arith.constant 0 : i32
    %24 = arith.cmpi eq, %arg0, %c0_i32_11 : i32
    %25 = arith.extui %24 : i1 to i32
    %c0_i32_12 = arith.constant 0 : i32
    %26 = arith.cmpi ne, %25, %c0_i32_12 : i32
    scf.if %26 {
      %c0_13 = arith.constant 0 : index
      %c0_14 = arith.constant 0 : index
      %27 = vector.load %arg4[%c0_13, %c0_14] : memref<8x1xf32, #tpu.memory_space<vmem>>, vector<8x1xf32>
      %28 = vector.shape_cast %27 : vector<8x1xf32> to vector<1x8x1xf32>
      %cst_15 = arith.constant dense<0.000000e+00> : vector<1xf32>
      %29 = vector.multi_reduction <add>, %28, %cst_15 [1, 2] : vector<1x8x1xf32> to vector<1xf32>
      %30 = vector.shape_cast %29 : vector<1xf32> to vector<1x1x1xf32>
      %31 = vector.extract %30[0, 0, 0] : f32 from vector<1x1x1xf32>
      %32 = vector.broadcast %31 : f32 to vector<1x1xf32>
      %cst_16 = arith.constant 8.000000e+00 : f32
      %33 = vector.broadcast %cst_16 : f32 to vector<1x1xf32>
      %34 = arith.divf %32, %33 : vector<1x1xf32>
      %cst_17 = arith.constant 0.000000e+00 : f32
      %35 = vector.broadcast %cst_17 : f32 to vector<1x1xf32>
      %36 = arith.subf %35, %34 : vector<1x1xf32>
      %37 = math.exp %36 : vector<1x1xf32>
      %cst_18 = arith.constant 1.000000e+00 : f32
      %38 = vector.broadcast %cst_18 : f32 to vector<1x1xf32>
      %39 = arith.subf %38, %37 : vector<1x1xf32>
      %40 = arith.mulf %39, %39 : vector<1x1xf32>
      %cst_19 = arith.constant 1.000000e+00 : f32
      %41 = vector.broadcast %cst_19 : f32 to vector<1x1xf32>
      %42 = arith.mulf %41, %40 : vector<1x1xf32>
      %43 = arith.mulf %42, %34 : vector<1x1xf32>
      %c0_20 = arith.constant 0 : index
      %c0_21 = arith.constant 0 : index
      %44 = vector.load %arg3[%c0_20, %c0_21] : memref<1x1xf32, #tpu.memory_space<vmem>>, vector<1x1xf32>
      tpu.vector_store %arg3[%c0_20, %c0_21], %43 {strides = array<i32>} : memref<1x1xf32, #tpu.memory_space<vmem>>, vector<1x1xf32>,
    } else {
    }
    return
  }
  func.func @transform_0(%arg0: i32) -> (i32, i32) {
    %c0_i32 = arith.constant 0 : i32
    %c0_i32_0 = arith.constant 0 : i32
    return %arg0, %c0_i32 : i32, i32
  }
  func.func @transform_1(%arg0: i32) -> (i32, i32) {
    %c0_i32 = arith.constant 0 : i32
    %c0_i32_0 = arith.constant 0 : i32
    return %arg0, %c0_i32 : i32, i32
  }
  func.func @transform_2(%arg0: i32) -> (i32, i32) {
    %c0_i32 = arith.constant 0 : i32
    %c0_i32_0 = arith.constant 0 : i32
    %c0_i32_1 = arith.constant 0 : i32
    return %c0_i32, %c0_i32_0 : i32, i32
  }
}

</mosaic_0001>

<bundles_post_ra>
// kernel: tpu_custom_call.1
= control target key start
LH: loop header
LB: loop body
LE: loop exit
PB: predicated region body
PF: predicated region fallthrough
CT: control target
= control target key end

     0   :  { %vm20_vm0 = vcmask 261120   ;;  %s161_s0 = inlined_call_operand.vmem [shape: f32[8,32], index: 0, kind: input, shape index: {}]   ;;  %s162_s1 = inlined_call_operand.vmem [shape: s32[8,1], index: 1, kind: input, shape index: {}]   ;;  %s163_s2 = inlined_call_operand.hbm [shape: f32[1,1], index: 2, kind: output, shape index: {}]  }
   0x1   :  { %v18_v0 = vld [vmem:[%s161_s0] sm:$0xff] }
   0x2   :  { %7 = vsyncpa [#allocation4], 0  ;;  %v21_v1 = vsel %vm20_vm0, %v18_v0, -inf  ;;  %v122_v2 = vmov 0   ;;  %v19_v3 = vld [vmem:[%s162_s1] sm:$0xff]  ;;  %v32_v7 = vlaneseq  ;;  %vm16_vm2 = vcmask 7168  }
   0x3   :  { %91 = vset.pattern.permute.xlu0 %v122_v2  ;;  %v123_v14 = vmov 0.0   ;;  %s124_s1 = smov [#allocation3]   ;;  %vm70_vm3 = vcmask 0  }
   0x4   :  { %22 = vmax.xlane.f32.xlu0 %v21_v1  ;;  %v33_v8 = vand.u32 127, %v32_v7  ;;  %17 = vst.msk [vmem:[#allocation2] sm:$0xff] %vm16_vm2, %v123_v14  ;;  %s78_s13 = sshll.u32 %s124_s1, 4  ;;  %s79_s13 = int_to_ptr.vmem [resolvable:$true] %s78_s13 }
   0x5   :  { %s98_s14 = scalar_lea.vmem %s79_s13, 16  ;;  %s102_s15 = scalar_lea.vmem %s79_s13, 32 }
   0x6   :  { %p99_p0 = scmp.ne.s32.totalorder %s79_s13, %s98_s14  ;;  %p103_p1 = scmp.lt.s32.totalorder %s79_s13, %s79_s13 }
   0x7   :  { %p104_p2 = scmp.lt.s32.totalorder %s102_s15, %s98_s14 }
   0x9   :  { %p105_p3 = por %p104_p2, %p103_p1 }
   0xb   :  { %v43_v19 = vld [vmem:[#allocation2] sm:$0xff]  ;;  %p106_p4 = pnand %p105_p3, %p99_p0 }
  0x1a   :  { %35 = vperm.xlu0 %91, %v19_v3  }
  0x91   :  { %v23_v4 = vpop.xlane.xlu0 %22 }
  0x92   :  { %v24_v5 = vsub.f32 %v18_v0, %v23_v4 }
  0x94   :  { %v25_v6 = vmul.f32 1.442695, %v24_v5 }
  0x96   :  { %92 = vpow2.f32 %v25_v6 }
  0x99   :  { %v36_v9 = vpop.permute.xlu0 %35 }
  0x9a   :  { %vm37_vm1 = vcmp.eq.s32.totalorder %v33_v8, %v36_v9 }
  0x9b   :  { %v38_v12 = vsel %vm37_vm1, %v24_v5, 0.0 }
  0x9c   :  { %v39_v13 = vsel %vm20_vm0, %v38_v12, 0.0 }
  0xa0   :  { %v93_v10 = vpop.eup %92 }
  0xa1   :  { %v27_v11 = vsel %vm20_vm0, %v93_v10, 0.0 }
  0xa2   :  { %28 = vadd.xlane.f32.xlu1 %v27_v11 }
  0xa6   :  { %40 = vadd.xlane.f32.xlu1 %v39_v13 }
 0x12f   :  { %v29_v15 = vpop.xlane.xlu1 %28 }
 0x130   :  { %94 = vlog2.f32 %v29_v15 }
 0x133   :  { %v41_v18 = vpop.xlane.xlu1 %40 }
 0x13a   :  { %v95_v16 = vpop.eup %94 }
 0x13b   :  { %v31_v17 = vmul.f32 0.6931472, %v95_v16 }
 0x13d   :  { %v42_v20 = vsub.f32 %v31_v17, %v41_v18 }
 0x13f   :  { %v44_v21 = vadd.f32 %v43_v19, %v42_v20 }
 0x141   :  { %46 = vst.msk [vmem:[#allocation2] sm:$0xff] %vm16_vm2, %v44_v21 }
 0x148   :  { %v50_v22 = vld [vmem:[#allocation2] sm:$0xff] }
 0x149   :  { %v51_v23 = vsel %vm16_vm2, %v50_v22, 0.0 }
 0x14a   :  { %52 = vadd.xlane.f32.xlu1 %v51_v23 }
 0x1d7   :  { %v53_v24 = vpop.xlane.xlu1 %52 }
 0x1d8   :  { %v54_v25 = vrot.slane %v53_v24, 4 }
 0x1da   :  { %v55_v26 = vadd.f32 %v54_v25, %v53_v24 }
 0x1dc   :  { %v56_v27 = vrot.slane %v55_v26, 2 }
 0x1de   :  { %v57_v28 = vadd.f32 %v56_v27, %v55_v26 }
 0x1e0   :  { %v58_v29 = vrot.slane %v57_v28, 1 }
 0x1e2   :  { %v59_v30 = vadd.f32 %v58_v29, %v57_v28 }
 0x1e4   :  { %86 = vpush %v59_v30 }
 0x215   :  { %s87_s0 = spop %86 }
 0x216   :  { %v61_v31 = vstv %s87_s0 }
 0x217   :  { %v63_v32 = vmul.f32 0.125, %v61_v31 }
 0x219   :  { %v64_v33 = vsub.f32 0.0, %v63_v32 }
 0x21b   :  { %v65_v34 = vmul.f32 1.442695, %v64_v33 }
 0x21d   :  { %96 = vpow2.f32 %v65_v34 }
 0x227   :  { %v97_v35 = vpop.eup %96 }
 0x228   :  { %v67_v36 = vsub.f32 1.0, %v97_v35 }
 0x22a   :  { %v68_v37 = vmul.f32 %v67_v36, %v67_v36 }
 0x22c   :  { %v69_v38 = vmul.f32 %v68_v37, %v63_v32 }
 0x22e   :  { %71 = vst.msk [vmem:[#allocation3] sm:$0x1] %vm70_vm3, %v69_v38 }
 0x22f   :  { %109 = shalt.err (!%p106_p4)
}
 0x230   :  { %s110_s18 = scalar_lea.hbm %s163_s2, 16 }
 0x231   :  { %p111_p5 = scmp.ne.s32.totalorder %s163_s2, %s110_s18  ;;  %p114_p6 = scmp.lt.u32.totalorder %s110_s18, %s163_s2 }
 0x233   :  { %p116_p7 = pnand %p114_p6, %p111_p5 }
 0x235   :  { %119 = shalt.err (!%p116_p7)
}
 0x236   :  { %81 = dma.vmem_to_hbm [thread:$0]  %s79_s13, 16, %s163_s2, [#allocation4]  }
 0x237   :  { %120 = dma.done.wait [#allocation4], 16  }
 0x238   :  { %121 = vsyncadd [#allocation4], 4294967280 }
 0x239   :  { %85 = vsyncpa [#allocation4], 1 }

</bundles_post_ra>
